<compile_context>
chip_gen: v7x
topology: tpu7x:2x2x1
jax: 0.10.0
libtpu: 0.0.40
codegen_flags: <defaults>
</compile_context>

<pallas_src>
import functools
import math

import jax
import jax.numpy as jnp
from jax.experimental import pallas as pl
from jax.experimental.pallas import tpu as pltpu


def _attention_mask_kernel(x_ref, o_ref, *, scale, fold, hw):
    # Block shape: (tb, fold*hw) — tb spatial "super-rows", lane-dense.
    xf = x_ref[...].astype(jnp.float32)
    tb = xf.shape[0]
    if fold == 1:
        s = jnp.sum(xf, axis=-1, keepdims=True)          # per-slab spatial sum
        o_ref[...] = (xf * (scale / s)).astype(o_ref.dtype)
    else:
        x3 = xf.reshape(tb, fold, hw)
        s = jnp.sum(x3, axis=-1, keepdims=True)           # (tb, fold, 1)
        o_ref[...] = (x3 * (scale / s)).reshape(tb, fold * hw).astype(o_ref.dtype)


def _choose_fold(b, hw):
    """Fold factor k so the lane width k*hw is a multiple of 128 (if possible)."""
    if hw % 128 == 0:
        return 1
    k = 128 // math.gcd(hw, 128)
    if k <= b and b % k == 0:
        return k
    return 1  # fall back to masked stores; still correct


def _choose_block_rows(rows, lane_width, itemsize):
    """Rows per block: sublane-packed, ~6 MiB input/block, >= 2 grid steps."""
    packing = 8 * max(1, 4 // itemsize)          # f32: 8, bf16: 16, 8-bit: 32
    target_bytes = 6 * 1024 * 1024               # x4 double-buffered in+out
    tb = max(packing, target_bytes // max(1, lane_width * itemsize))

    # Cap so the single "parallel" grid axis has >= 2 steps (v7x dual-TC).
    if rows >= 2 * packing:
        half = -(-rows // 2)                     # cdiv(rows, 2)
        half = -(-half // packing) * packing     # round up to packing
        tb = min(tb, half)

    tb = max(packing, (tb // packing) * packing)
    if tb >= rows:
        return rows                              # full extent is always legal

    # Prefer a tb that divides rows evenly (no ragged last block), if it does
    # not shrink the block by more than 2x.
    if rows % tb != 0:
        d = tb
        while d >= max(packing, tb // 2):
            if rows % d == 0:
                return d
            d -= packing
    return tb


def attention_mask(x, *, donate=False):
    """Pallas equivalent of Attention_mask.forward for a 5-D NCTHW input."""
    n, c, t, h, w = x.shape
    b = n * c * t
    hw = h * w
    scale = float(h) * float(w) * 0.5
    itemsize = jnp.dtype(x.dtype).itemsize

    fold = _choose_fold(b, hw)
    rows = b // fold
    lane = fold * hw

    # NCTHW is contiguous in the (H, W) minor dims, so this reshape is free
    # layout plumbing presenting a lane-dense last axis to the kernel.
    x_flat = x.reshape(rows, lane)

    tb = _choose_block_rows(rows, lane, itemsize)
    grid = (pl.cdiv(rows, tb),)

    kernel = functools.partial(
        _attention_mask_kernel, scale=scale, fold=fold, hw=hw
    )

    cost = pl.CostEstimate(
        flops=2 * b * hw,                 # one reduce-add + one mul per element
        transcendentals=0,
        bytes_accessed=2 * b * hw * itemsize,
    )

    out_flat = pl.pallas_call(
        kernel,
        out_shape=jax.ShapeDtypeStruct((rows, lane), x.dtype),
        grid=grid,
        in_specs=[pl.BlockSpec((tb, lane), lambda i: (i, 0))],
        out_specs=pl.BlockSpec((tb, lane), lambda i: (i, 0)),
        compiler_params=pltpu.CompilerParams(
            dimension_semantics=("parallel",),
            vmem_limit_bytes=48 * 1024 * 1024,
        ),
        cost_estimate=cost,
        input_output_aliases={0: 0} if donate else {},
    )(x_flat)

    return out_flat.reshape(n, c, t, h, w)


def attention_mask_ref(x):
    """Pure-JAX reference mirroring the PyTorch forward."""
    xsum = jnp.sum(x, axis=3, keepdims=True)
    xsum = jnp.sum(xsum, axis=4, keepdims=True)
    h, w = x.shape[3], x.shape[4]
    return x / xsum * h * w * 0.5


if __name__ == "__main__":
    key = jax.random.PRNGKey(0)
    # Small 5-D NCTHW activation: N=2, C=4, T=8, H=16, W=16.
    x = jax.random.uniform(key, (2, 4, 8, 16, 16), dtype=jnp.float32) + 0.1

    out = attention_mask(x)
    out = jax.block_until_ready(out)

    ref = attention_mask_ref(x)
    assert out.shape == ref.shape
    assert jnp.allclose(out, ref, atol=1e-5, rtol=1e-5), "mismatch vs reference"

    print("KERNEL_OK")
</pallas_src>

<mosaic_0001>
module attributes {stable_mosaic.version = 11 : i64} {
  func.func @_attention_mask_kernel(%arg0: i32, %arg1: memref<32x256xf32, #tpu.memory_space<vmem>>, %arg2: memref<32x256xf32, #tpu.memory_space<vmem>>) attributes {dimension_semantics = [#tpu.dimension_semantics<parallel>], iteration_bounds = array<i64: 2>, scalar_prefetch = 0 : i64, scratch_operands = 0 : i64, tpu.core_type = #tpu.core_type<tc>, window_params = [{transform_indices = @transform_0, window_bounds = array<i64: 32, 256>}, {transform_indices = @transform_1, window_bounds = array<i64: 32, 256>}]} {
    %c0 = arith.constant 0 : index
    %c0_0 = arith.constant 0 : index
    %0 = vector.load %arg1[%c0, %c0_0] : memref<32x256xf32, #tpu.memory_space<vmem>>, vector<32x256xf32>
    %cst = arith.constant dense<0.000000e+00> : vector<32xf32>
    %1 = vector.multi_reduction <add>, %0, %cst [1] : vector<32x256xf32> to vector<32xf32>
    %2 = vector.shape_cast %1 : vector<32xf32> to vector<32x1xf32>
    %cst_1 = arith.constant 1.280000e+02 : f32
    %3 = vector.broadcast %cst_1 : f32 to vector<32x1xf32>
    %4 = arith.divf %3, %2 : vector<32x1xf32>
    %5 = vector.broadcast %4 : vector<32x1xf32> to vector<32x256xf32>
    %6 = arith.mulf %0, %5 : vector<32x256xf32>
    %c0_2 = arith.constant 0 : index
    %c0_3 = arith.constant 0 : index
    %7 = vector.load %arg2[%c0_2, %c0_3] : memref<32x256xf32, #tpu.memory_space<vmem>>, vector<32x256xf32>
    tpu.vector_store %arg2[%c0_2, %c0_3], %6 {strides = array<i32>} : memref<32x256xf32, #tpu.memory_space<vmem>>, vector<32x256xf32>,
    return
  }
  func.func @transform_0(%arg0: i32) -> (i32, i32) {
    %c0_i32 = arith.constant 0 : i32
    %c0_i32_0 = arith.constant 0 : i32
    return %arg0, %c0_i32 : i32, i32
  }
  func.func @transform_1(%arg0: i32) -> (i32, i32) {
    %c0_i32 = arith.constant 0 : i32
    %c0_i32_0 = arith.constant 0 : i32
    return %arg0, %c0_i32 : i32, i32
  }
}

</mosaic_0001>

<bundles_post_ra>
// kernel: tpu_custom_call.1
= control target key start
LH: loop header
LB: loop body
LE: loop exit
PB: predicated region body
PF: predicated region fallthrough
CT: control target
= control target key end

     0   :  { %6 = vsyncpa [#allocation3], 0  ;;  %s628_s0 = inlined_call_operand.hbm [shape: f32[64,256], index: 0, kind: input, shape index: {}]   ;;  %s629_s1 = inlined_call_operand.hbm [shape: f32[64,256], index: 1, kind: output, shape index: {}]  }
   0x1   :  { %8 = vsyncpa [#allocation3 + $0x1], 0 }
   0x2   :  { %9 = vsyncpa [#allocation4], 0 }
   0x3   :  { %11 = vsyncpa [#allocation4 + $0x1], 0  ;;  %s462_s6 = smov 0   ;;  %s464_s7 = smov 0  }
   0x4   :  { %s466_s8 = smov 0   ;;  %s468_s9 = smov 0  }
   0x5 LB: > { %s483_s10 = sadd.s32 4294967295, %s444_s9   ;;  %s270_s11 = sadd.s32 4294967294, %s444_s9   ;;  %s444_s9 = sphi %s468_s9, %s642_s9   ;;  %s440_s8 = sphi %s466_s8, %s641_s8   ;;  %s436_s7 = sphi %s464_s7, %s640_s7   ;;  %s432_s6 = sphi %s462_s6, %s639_s6  }
   0x6   : > { %s487_s12 = sadd.s32 1, %s444_s9   ;;  %s24_s13 = sadd.s32 1, %s440_s8 }
   0x7   : > { %s21_s14 = ssub.s32 %s444_s9, %s487_s12  ;;  %p31_p0 = scmp.ne.s32.totalorder %s440_s8, %s436_s7 }
   0x8   : > { %p22_p1 = scmp.eq.s32.totalorder %s21_s14, 0  ;;  %p32_p2 = scmp.eq.s32.totalorder %s444_s9, 0 }
   0x9   : > { %p37_p3 = scmp.ne.s32.totalorder %s436_s7, %s432_s6  ;;  %p38_p4 = scmp.eq.s32.totalorder %s483_s10, 0 }
   0xa   : > { %s499_s15 = scalar_select %p22_p1, %s440_s8, %s24_s13  }
   0xb   : > { %p501_p5 = por %p32_p2, %p31_p0  ;;  %p505_p6 = por %p38_p4, %p37_p3 }
   0xc   : > { %p61_p7 = scmp.eq.s32.totalorder %s483_s10, 1  ;;  %p67_p8 = scmp.eq.s32.totalorder %s270_s11, 1 }
   0xd   : > { %p302_p10 = scmp.lt.s32.totalorder %s444_s9, 2  ;;  %s87_s20 = sand.u32 1, %s440_s8  }
   0xe   : > { %p512_p11 = por %p61_p7, %p31_p0  ;;  %p516_p12 = por %p67_p8, %p37_p3 }
   0xf   : > { %s287_s21 = sshll.u32 %s444_s9, 10  ;;  %s273_s22 = sshll.u32 %s87_s20, 6 }
  0x10   : > { %s633_s18 = scalar_select %p512_p11, 1, 0 }
  0x11   : > { %s634_s19 = scalar_select %p516_p12, 1, 0 }
  0x12   : > { %s525_s25 = scalar_lea.hbm %s628_s0, %s287_s21  ;;  %s91_s26 = scalar_lea.vmem [#allocation2], %s273_s22 }
  0x13   : > { %s99_s27 = sshll.u32 %s91_s26, 4  ;;  %p529_p13 = pnand %p302_p10, %p501_p5  ;;  %s533_s27 = int_to_ptr.vmem [resolvable:$true] %s99_s27 }
  0x14   : > { %s535_s29 = scalar_lea.sflag [#allocation3], %s87_s20  ;;  %s348_s30 = scalar_lea.hbm %s525_s25, 1024 }
  0x15   : > { %p349_p0 = scmp.ne.s32.totalorder %s525_s25, %s348_s30  ;;  %p350_p1 = pneg %p529_p13 }
  0x16   : > { %s353_s4 = scalar_lea.hbm %s628_s0, 2048  ;;  %p354_p4 = scmp.lt.u32.totalorder %s525_s25, %s628_s0 }
  0x17   : > { %p351_p2 = pnand %p350_p1, %p349_p0  ;;  %p355_p5 = scmp.lt.u32.totalorder %s353_s4, %s348_s30 }
  0x18   : > { %p357_p8 = scmp.lt.u32.totalorder %s348_s30, %s525_s25 }
  0x19   : > { %p352_p3 = pneg %p351_p2  ;;  %p356_p7 = por %p355_p5, %p354_p4 }
  0x1b   : > { %p358_p10 = por %p357_p8, %p356_p7 }
  0x1d   : > { %p359_p9 = pnand %p358_p10, %p352_p3 }
  0x1f   : > { %362 = shalt.err (!%p359_p9)
}
  0x20   : > { %s363_s13 = scalar_lea.vmem %s533_s27, 1024  ;;  %s446_s14 = smov [#allocation2]  }
  0x21   : > { %p364_p0 = scmp.ne.s32.totalorder %s533_s27, %s363_s13  ;;  %s368_s16 = sshll.u32 %s446_s14, 4  ;;  %s369_s16 = int_to_ptr.vmem [resolvable:$false] %s368_s16 }
  0x22   : > { %s370_s20 = scalar_lea.vmem %s369_s16, 2048  ;;  %p371_p11 = scmp.lt.s32.totalorder %s533_s27, %s369_s16 }
  0x23   : > { %p366_p2 = pnand %p364_p0, %p350_p1  ;;  %p372_p4 = scmp.lt.s32.totalorder %s370_s20, %s363_s13 }
  0x25   : > { %p367_p12 = pneg %p366_p2  ;;  %p373_p5 = por %p372_p4, %p371_p11 }
  0x27   : > { %p374_p7 = pnand %p373_p5, %p367_p12 }
  0x29   : > { %377 = shalt.err (!%p374_p7)
}
  0x2a   : > { %s447_s21 = smov 256   ;;  %s448_s22 = smov 16  }
  0x2b   : > { %297 = dma.hbm_to_vmem [thread:$0]  (!%p529_p13), %s525_s25, 1024, %s533_s27, %s535_s29, %s447_s21, %s447_s21, %s448_s22  }
  0x2c   : > { %p277_p9 = scmp.ge.s32.totalorder %s444_s9, 1  ;;  %p107_p1 = scmp.lt.s32.totalorder %s444_s9, 3 }
  0x2e   : > { %p108_p3 = pnand %p277_p9, %p107_p1 }
  0x2f   : > { %s566_s23 = sand.u32 (!%p108_p3), 1, %s436_s7  }
  0x30   : > { %111 = sbr.rel (%p108_p3) target bundleno = 236 (0xec), region = 24  ;;  %s278_s24 = sshll.u32 (!%p108_p3), %s566_s23, 6 }
  0x31   : > { %s114_s26 = scalar_lea.sflag (!%p108_p3), [#allocation3], %s566_s23  ;;  %s117_s30 = scalar_lea.vmem (!%p108_p3), [#allocation2], %s278_s24 }
  0x37   : > { %423 = dma.done.wait (%p505_p6), %s114_s26, 1024  }
  0x38   : > { %425 = vsyncadd (%p505_p6), %s114_s26, 4294966272  ;;  %v142_v0 = vld [vmem:[%s117_s30 + $0x20] sm:$0xff]  ;;  %v143_v1 = vld [vmem:[%s117_s30 + $0x28] sm:$0xff]  ;;  %s289_s17 = sshll.u32 %s483_s10, 10  ;;  %s135_s25 = scalar_lea.vmem [#allocation5], %s278_s24 }
  0x39   : > { %v138_v2 = vld [vmem:[%s117_s30] sm:$0xff]  ;;  %v152_v3 = vadd.f32 %v143_v1, %v142_v0  ;;  %v139_v4 = vld [vmem:[%s117_s30 + $0x8] sm:$0xff]  ;;  %v144_v5 = vld [vmem:[%s117_s30 + $0x30] sm:$0xff]  ;;  %s197_s27 = sshll.u32 %s135_s25, 4  ;;  %s582_s2 = scalar_lea.hbm %s629_s1, %s289_s17  ;;  %s584_s27 = int_to_ptr.vmem [resolvable:$true] %s197_s27 }
  0x3a   : > { %v145_v6 = vld [vmem:[%s117_s30 + $0x38] sm:$0xff]  ;;  %v146_v7 = vadd.f32 %v139_v4, %v138_v2  ;;  %v140_v8 = vld [vmem:[%s117_s30 + $0x10] sm:$0xff]  ;;  %s183_s10 = scalar_lea.sflag [#allocation4], %s566_s23  ;;  %s378_s3 = scalar_lea.vmem %s584_s27, 1024 }
  0x3b   : > { %v141_v9 = vld [vmem:[%s117_s30 + $0x18] sm:$0xff]  ;;  %153 = vadd.xlane.f32.xlu1 %v152_v3  ;;  %v155_v10 = vadd.f32 %v145_v6, %v144_v5  ;;  %p379_p6 = scmp.ne.s32.totalorder %s584_s27, %s378_s3  ;;  %p636_p11 = scmp.ne.s32.totalorder %s633_s18, 0 }
  0x3c   : > { %147 = vadd.xlane.f32.xlu0 %v146_v7  ;;  %v149_v11 = vadd.f32 %v141_v9, %v140_v8  ;;  %s449_s4 = smov [#allocation5]  }
  0x3d   : > { %p380_p12 = pnand %p379_p6, %p636_p11  ;;  %s382_s5 = sshll.u32 %s449_s4, 4  ;;  %s383_s5 = int_to_ptr.vmem [resolvable:$false] %s382_s5 }
  0x3e   : > { %s384_s11 = scalar_lea.vmem %s383_s5, 2048  ;;  %p385_p8 = scmp.lt.s32.totalorder %s584_s27, %s383_s5 }
  0x3f   : > { %156 = vadd.xlane.f32.xlu1 %v155_v10  ;;  %p381_p13 = pneg %p380_p12  ;;  %p386_p10 = scmp.lt.s32.totalorder %s384_s11, %s378_s3 }
  0x40   : > { %150 = vadd.xlane.f32.xlu0 %v149_v11 }
  0x41   : > { %p387_p0 = por %p386_p10, %p385_p8 }
  0x43   : > { %p388_p2 = pnand %p387_p0, %p381_p13 }
  0xc8   : > { %v154_v12 = vpop.xlane.xlu1 %153 }
  0xc9   : > { %340 = vrcp.f32 %v154_v12  ;;  %v148_v13 = vpop.xlane.xlu0 %147 }
  0xca   : > { %342 = vrcp.f32 %v148_v13 }
  0xcc   : > { %v157_v14 = vpop.xlane.xlu1 %156 }
  0xcd   : > { %344 = vrcp.f32 %v157_v14  ;;  %v151_v15 = vpop.xlane.xlu0 %150 }
  0xce   : > { %346 = vrcp.f32 %v151_v15 }
  0xd3   : > { %v341_v16 = vpop.eup %340 }
  0xd4   : > { %v343_v17 = vpop.eup %342  ;;  %v163_v18 = vmul.f32 128.0, %v341_v16 }
  0xd5   : > { %v159_v19 = vmul.f32 128.0, %v343_v17 }
  0xd6   : > { %v170_v20 = vmul.f32 %v163_v18, %v142_v0  ;;  %v171_v21 = vmul.f32 %v163_v18, %v143_v1 }
  0xd7   : > { %v345_v22 = vpop.eup %344  ;;  %v166_v23 = vmul.f32 %v159_v19, %v138_v2  ;;  %v167_v24 = vmul.f32 %v159_v19, %v139_v4 }
  0xd8   : > { %v347_v25 = vpop.eup %346  ;;  %178 = vst [vmem:[%s135_s25 + $0x20] sm:$0xff] %v170_v20  ;;  %179 = vst [vmem:[%s135_s25 + $0x28] sm:$0xff] %v171_v21  ;;  %v165_v26 = vmul.f32 128.0, %v345_v22 }
  0xd9   : > { %174 = vst [vmem:[%s135_s25] sm:$0xff] %v166_v23  ;;  %175 = vst [vmem:[%s135_s25 + $0x8] sm:$0xff] %v167_v24  ;;  %v161_v27 = vmul.f32 128.0, %v347_v25 }
  0xda   : > { %v172_v28 = vmul.f32 %v165_v26, %v144_v5  ;;  %v173_v29 = vmul.f32 %v165_v26, %v145_v6 }
  0xdb   : > { %v168_v30 = vmul.f32 %v161_v27, %v140_v8  ;;  %v169_v31 = vmul.f32 %v161_v27, %v141_v9 }
  0xdc   : > { %180 = vst [vmem:[%s135_s25 + $0x30] sm:$0xff] %v172_v28  ;;  %181 = vst [vmem:[%s135_s25 + $0x38] sm:$0xff] %v173_v29 }
  0xdd   : > { %176 = vst [vmem:[%s135_s25 + $0x10] sm:$0xff] %v168_v30  ;;  %177 = vst [vmem:[%s135_s25 + $0x18] sm:$0xff] %v169_v31 }
  0xde   : > { %391 = shalt.err (!%p388_p2)
}
  0xdf   : > { %s392_s13 = scalar_lea.hbm %s582_s2, 1024  ;;  %s396_s20 = scalar_lea.hbm %s629_s1, 2048 }
  0xe0   : > { %p393_p4 = scmp.ne.s32.totalorder %s582_s2, %s392_s13  ;;  %p397_p9 = scmp.lt.u32.totalorder %s582_s2, %s629_s1 }
  0xe1   : > { %p398_p1 = scmp.lt.u32.totalorder %s396_s20, %s392_s13  ;;  %p400_p6 = scmp.lt.u32.totalorder %s392_s13, %s582_s2 }
  0xe2   : > { %p394_p5 = pnand %p393_p4, %p636_p11 }
  0xe3   : > { %p399_p3 = por %p398_p1, %p397_p9 }
  0xe4   : > { %p395_p7 = pneg %p394_p5 }
  0xe5   : > { %p401_p12 = por %p400_p6, %p399_p3 }
  0xe7   : > { %p402_p13 = pnand %p401_p12, %p395_p7 }
  0xe9   : > { %405 = shalt.err (!%p402_p13)
}
  0xea   : > { %s450_s24 = smov 256   ;;  %s451_s26 = smov 16  }
  0xeb   : > { %292 = dma.vmem_to_hbm [thread:$0]  (%p636_p11), %s584_s27, 1024, %s582_s2, %s183_s10, %s450_s24, %s450_s24, %s451_s26  }
  0xec PF: > { %s212_s30 = sand.u32 1, %s432_s6   ;;  %p637_p8 = scmp.ne.s32.totalorder %s634_s19, 0 }
  0xed   : > { %p638_p10 = scmp.ge.s32.totalorder %s444_s9, 2  ;;  %s213_s17 = scalar_lea.sflag [#allocation4], %s212_s30 }
  0xef   : > { %p299_p0 = pnand %p638_p10, %p637_p8 }
  0xf1   : > { %427 = dma.done.wait (!%p299_p0), %s213_s17, 1024  }
  0xf2   : > { %429 = vsyncadd (!%p299_p0), %s213_s17, 4294966272  ;;  %p14_p2 = scmp.ge.s32.totalorder %s487_s12, 4   ;;  %s639_s6 = smov %s436_s7 }
  0xf3   : > { %s640_s7 = smov %s440_s8  ;;  %s641_s8 = smov %s499_s15 }
  0xf4   : > { %s642_s9 = smov %s487_s12  ;;  %16 = sbr.rel (!%p14_p2) target bundleno = 5 (0x5), region = 69 }
  0xfb   :  { %218 = vsyncpa [#allocation3], 1 }
  0xfc   :  { %220 = vsyncpa [#allocation3 + $0x1], 1 }
  0xfd   :  { %221 = vsyncpa [#allocation4], 1 }
  0xfe   :  { %223 = vsyncpa [#allocation4 + $0x1], 1 }

</bundles_post_ra>
